<compile_context>
chip_gen: v7x
topology: tpu7x:2x2x1
jax: 0.10.0
libtpu: 0.0.40
codegen_flags: <defaults>
</compile_context>

<pallas_src>
import functools

import jax
import jax.numpy as jnp
from jax.experimental import pallas as pl
from jax.experimental.pallas import tpu as pltpu


def edge_model_kernel(x_ref, w1_ref, b1_ref, w2_ref, b2_ref, out_ref, *, res_start):
    # Feature-major: E sits on the 128-lane axis -> lane-dense loads/stores.
    x = x_ref[...]                                           # (in1, tile_e) bf16
    h = jnp.dot(w1_ref[...], x,
                preferred_element_type=jnp.float32) + b1_ref[...]   # (hidden, tile_e) f32
    h = jnp.maximum(h, 0.0)                                  # ReLU in f32 (v5e-safe)
    out = jnp.dot(w2_ref[...], h.astype(w2_ref.dtype),
                  preferred_element_type=jnp.float32)        # (edge_out, tile_e) f32
    # bias + residual (edge rows of the concatenated input) in f32, then one cast.
    out = out + b2_ref[...] + x[res_start:, :].astype(jnp.float32)
    out_ref[...] = out.astype(out_ref.dtype)                 # lane-dense bf16 store


@functools.partial(jax.jit, static_argnames=("tile_e", "compute_dtype"))
def edge_model_forward(src, dest, edge_attr, params, *,
                       tile_e=4096, compute_dtype=jnp.bfloat16):
    """Module-compatible wrapper.

    src/dest: (E, node_in), edge_attr: (E, edge_in)  ->  (E, edge_out) in src.dtype.
    """
    E, node_in = src.shape
    edge_in = edge_attr.shape[1]
    w1, b1, w2, b2 = params
    in1 = 2 * node_in + edge_in
    hidden = w1.shape[1]
    edge_out = w2.shape[1]
    assert w1.shape[0] == in1, "W1 must have 2*node_in + edge_in input rows"
    assert edge_out == edge_in, "residual connection requires edge_out == edge_in"

    # Grid: ceil(E / tile_e), rounded up to even (>1) so v7x's two TensorCores
    # get equal work under dimension_semantics=("parallel",).
    n_tiles = -(-E // tile_e)
    if n_tiles > 1:
        n_tiles += n_tiles % 2
    E_pad = n_tiles * tile_e
    pad = E_pad - E

    # ONE fused prep pass: cast + concat + pad + transpose -> lane-dense (in1, E_pad).
    x = jnp.concatenate([src, dest, edge_attr], axis=1).astype(compute_dtype)
    xT = jnp.pad(x, ((0, pad), (0, 0))).T                    # (in1, E_pad) bf16

    # Weights: single stacked W1^T, W2^T in compute dtype; biases stay f32.
    w1T = w1.T.astype(compute_dtype)                         # (hidden, in1)
    w2T = w2.T.astype(compute_dtype)                         # (edge_out, hidden)
    b1c = b1.reshape(-1, 1).astype(jnp.float32)              # (hidden, 1)
    b2c = b2.reshape(-1, 1).astype(jnp.float32)              # (edge_out, 1)

    col_spec = lambda F: pl.BlockSpec((F, tile_e), lambda i: (0, i))  # per-edge tiles
    full_spec = lambda R, C: pl.BlockSpec((R, C), lambda i: (0, 0))   # resident weights

    itemsize = jnp.dtype(compute_dtype).itemsize
    flops = 2 * E_pad * (in1 * hidden + hidden * edge_out)
    bytes_accessed = (in1 * E_pad * itemsize                         # activations in (bf16)
                      + (in1 * hidden + hidden * edge_out) * itemsize  # weights
                      + (hidden + edge_out) * 4                      # biases (f32)
                      + edge_out * E_pad * itemsize)                 # output (bf16)

    kernel = functools.partial(edge_model_kernel, res_start=2 * node_in)

    outT = pl.pallas_call(
        kernel,
        out_shape=jax.ShapeDtypeStruct((edge_out, E_pad), compute_dtype),
        grid_spec=pltpu.PrefetchScalarGridSpec(
            num_scalar_prefetch=0,
            grid=(n_tiles,),
            in_specs=[
                col_spec(in1),                 # xT  (concatenated activations)
                full_spec(hidden, in1),        # W1^T
                full_spec(hidden, 1),          # b1
                full_spec(edge_out, hidden),   # W2^T
                full_spec(edge_out, 1),        # b2
            ],
            out_specs=col_spec(edge_out),
        ),
        compiler_params=pltpu.CompilerParams(
            dimension_semantics=("parallel",)),
        cost_estimate=pl.CostEstimate(flops=flops, transcendentals=0,
                                      bytes_accessed=bytes_accessed),
    )(xT, w1T, b1c, w2T, b2c)

    # Module-layout result: drop the padded tail, transpose back, restore dtype.
    # (A fused consumer should instead use outT[:, :E] — lane-dense bf16 — and
    # skip this pass entirely.)
    return outT[:, :E].T.astype(src.dtype)


def init_params(key, node_in, edge_in, edge_out, hidden):
    """Deterministic parameter init (PyTorch Linear-like uniform fan-in)."""
    in1 = 2 * node_in + edge_in
    lim1 = float(in1) ** -0.5
    lim2 = float(hidden) ** -0.5
    k = jax.random.split(key, 4)
    w1 = jax.random.uniform(k[0], (in1, hidden), jnp.float32, -lim1, lim1)
    b1 = jax.random.uniform(k[1], (hidden,), jnp.float32, -lim1, lim1)
    w2 = jax.random.uniform(k[2], (hidden, edge_out), jnp.float32, -lim2, lim2)
    b2 = jax.random.uniform(k[3], (edge_out,), jnp.float32, -lim2, lim2)
    return w1, b1, w2, b2


def reference_forward(src, dest, edge_attr, w1, b1, w2, b2):
    x = jnp.concatenate([src, dest, edge_attr], axis=1)
    h = jnp.maximum(x @ w1 + b1, 0.0)
    out = h @ w2 + b2
    return out + edge_attr


if __name__ == "__main__":
    # Small shapes consistent with the module's forward.  E chosen so the grid
    # exercises the cdiv + even-rounding + zero-padded-tail path (3 -> 4 tiles).
    E, node_in, edge_in, edge_out, hidden = 5000, 8, 16, 16, 32
    tile_e = 2048

    key = jax.random.PRNGKey(0)
    k_src, k_dst, k_edge, k_param = jax.random.split(key, 4)
    src = jax.random.normal(k_src, (E, node_in), jnp.float32)
    dest = jax.random.normal(k_dst, (E, node_in), jnp.float32)
    edge_attr = jax.random.normal(k_edge, (E, edge_in), jnp.float32)

    params = init_params(k_param, node_in, edge_in, edge_out, hidden)
    w1, b1, w2, b2 = params

    out = edge_model_forward(src, dest, edge_attr, params, tile_e=tile_e)
    out = jax.block_until_ready(out)

    # Reference on bf16-rounded inputs/weights (matches the kernel's boundary
    # cast and bf16 residual); biases / accumulation in f32.
    _q = lambda a: a.astype(jnp.bfloat16).astype(jnp.float32)
    ref = reference_forward(_q(src), _q(dest), _q(edge_attr), _q(w1), b1, _q(w2), b2)

    assert out.shape == (E, edge_out)
    max_err = float(jnp.max(jnp.abs(out - ref)))
    assert jnp.allclose(out, ref, atol=5e-2, rtol=5e-2), f"mismatch vs reference (max abs err {max_err})"

    print("KERNEL_OK")
</pallas_src>

<mosaic_0001>
module attributes {stable_mosaic.version = 11 : i64} {
  func.func @edge_model_kernel(%arg0: i32, %arg1: memref<32x2048xbf16, #tpu.memory_space<vmem>>, %arg2: memref<32x32xbf16, #tpu.memory_space<vmem>>, %arg3: memref<32x1xf32, #tpu.memory_space<vmem>>, %arg4: memref<16x32xbf16, #tpu.memory_space<vmem>>, %arg5: memref<16x1xf32, #tpu.memory_space<vmem>>, %arg6: memref<16x2048xbf16, #tpu.memory_space<vmem>>) attributes {dimension_semantics = [#tpu.dimension_semantics<parallel>], iteration_bounds = array<i64: 4>, scalar_prefetch = 0 : i64, scratch_operands = 0 : i64, tpu.core_type = #tpu.core_type<tc>, window_params = [{transform_indices = @transform_0, window_bounds = array<i64: 32, 2048>}, {pipeline_mode = #tpu.pipeline_mode<synchronous>, transform_indices = @transform_1, window_bounds = array<i64: 32, 32>}, {pipeline_mode = #tpu.pipeline_mode<synchronous>, transform_indices = @transform_2, window_bounds = array<i64: 32, 1>}, {pipeline_mode = #tpu.pipeline_mode<synchronous>, transform_indices = @transform_3, window_bounds = array<i64: 16, 32>}, {pipeline_mode = #tpu.pipeline_mode<synchronous>, transform_indices = @transform_4, window_bounds = array<i64: 16, 1>}, {transform_indices = @transform_5, window_bounds = array<i64: 16, 2048>}]} {
    %c0 = arith.constant 0 : index
    %c0_0 = arith.constant 0 : index
    %0 = vector.load %arg1[%c0, %c0_0] : memref<32x2048xbf16, #tpu.memory_space<vmem>>, vector<32x2048xbf16>
    %c0_1 = arith.constant 0 : index
    %c0_2 = arith.constant 0 : index
    %1 = vector.load %arg2[%c0_1, %c0_2] : memref<32x32xbf16, #tpu.memory_space<vmem>>, vector<32x32xbf16>
    %cst = arith.constant dense<0.000000e+00> : vector<32x2048xf32>
    %2 = tpu.matmul %1, %0, %cst {dimension_numbers = #tpu.dot_dimension_numbers<[1], [0], [0], [1], [0, 0, 1, 1], [], []>} : vector<32x32xbf16>, vector<32x2048xbf16>, vector<32x2048xf32> -> vector<32x2048xf32>
    %c0_3 = arith.constant 0 : index
    %c0_4 = arith.constant 0 : index
    %3 = vector.load %arg3[%c0_3, %c0_4] : memref<32x1xf32, #tpu.memory_space<vmem>>, vector<32x1xf32>
    %4 = vector.broadcast %3 : vector<32x1xf32> to vector<32x2048xf32>
    %5 = arith.addf %2, %4 : vector<32x2048xf32>
    %cst_5 = arith.constant 0.000000e+00 : f32
    %6 = vector.broadcast %cst_5 : f32 to vector<32x2048xf32>
    %7 = arith.maximumf %5, %6 : vector<32x2048xf32>
    %c0_6 = arith.constant 0 : index
    %c0_7 = arith.constant 0 : index
    %8 = vector.load %arg4[%c0_6, %c0_7] : memref<16x32xbf16, #tpu.memory_space<vmem>>, vector<16x32xbf16>
    %9 = arith.truncf %7 : vector<32x2048xf32> to vector<32x2048xbf16>
    %cst_8 = arith.constant dense<0.000000e+00> : vector<16x2048xf32>
    %10 = tpu.matmul %8, %9, %cst_8 {dimension_numbers = #tpu.dot_dimension_numbers<[1], [0], [0], [1], [0, 0, 1, 1], [], []>} : vector<16x32xbf16>, vector<32x2048xbf16>, vector<16x2048xf32> -> vector<16x2048xf32>
    %c0_9 = arith.constant 0 : index
    %c0_10 = arith.constant 0 : index
    %11 = vector.load %arg5[%c0_9, %c0_10] : memref<16x1xf32, #tpu.memory_space<vmem>>, vector<16x1xf32>
    %12 = vector.broadcast %11 : vector<16x1xf32> to vector<16x2048xf32>
    %13 = arith.addf %10, %12 : vector<16x2048xf32>
    %14 = vector.extract_strided_slice %0 {offsets = [16, 0], sizes = [16, 2048], strides = [1, 1]} : vector<32x2048xbf16> to vector<16x2048xbf16>
    %15 = arith.extf %14 : vector<16x2048xbf16> to vector<16x2048xf32>
    %16 = arith.addf %13, %15 : vector<16x2048xf32>
    %17 = arith.truncf %16 : vector<16x2048xf32> to vector<16x2048xbf16>
    %c0_11 = arith.constant 0 : index
    %c0_12 = arith.constant 0 : index
    %18 = vector.load %arg6[%c0_11, %c0_12] : memref<16x2048xbf16, #tpu.memory_space<vmem>>, vector<16x2048xbf16>
    tpu.vector_store %arg6[%c0_11, %c0_12], %17 {strides = array<i32>} : memref<16x2048xbf16, #tpu.memory_space<vmem>>, vector<16x2048xbf16>,
    return
  }
  func.func @transform_0(%arg0: i32) -> (i32, i32) {
    %c0_i32 = arith.constant 0 : i32
    %c0_i32_0 = arith.constant 0 : i32
    return %c0_i32, %arg0 : i32, i32
  }
  func.func @transform_1(%arg0: i32) -> (i32, i32) {
    %c0_i32 = arith.constant 0 : i32
    %c0_i32_0 = arith.constant 0 : i32
    %c0_i32_1 = arith.constant 0 : i32
    return %c0_i32, %c0_i32_0 : i32, i32
  }
  func.func @transform_2(%arg0: i32) -> (i32, i32) {
    %c0_i32 = arith.constant 0 : i32
    %c0_i32_0 = arith.constant 0 : i32
    %c0_i32_1 = arith.constant 0 : i32
    return %c0_i32, %c0_i32_0 : i32, i32
  }
  func.func @transform_3(%arg0: i32) -> (i32, i32) {
    %c0_i32 = arith.constant 0 : i32
    %c0_i32_0 = arith.constant 0 : i32
    %c0_i32_1 = arith.constant 0 : i32
    return %c0_i32, %c0_i32_0 : i32, i32
  }
  func.func @transform_4(%arg0: i32) -> (i32, i32) {
    %c0_i32 = arith.constant 0 : i32
    %c0_i32_0 = arith.constant 0 : i32
    %c0_i32_1 = arith.constant 0 : i32
    return %c0_i32, %c0_i32_0 : i32, i32
  }
  func.func @transform_5(%arg0: i32) -> (i32, i32) {
    %c0_i32 = arith.constant 0 : i32
    %c0_i32_0 = arith.constant 0 : i32
    return %c0_i32, %arg0 : i32, i32
  }
}

</mosaic_0001>

<bundles_post_ra>
// kernel: edge_model_forward.1
= control target key start
LH: loop header
LB: loop body
LE: loop exit
PB: predicated region body
PF: predicated region fallthrough
CT: control target
= control target key end

     0   :  { %s1909_s18 = smov 0   ;;  %s1911_s19 = smov 0   ;;  %s2420_s0 = inlined_call_operand.vmem [shape: bf16[32,8192], index: 0, kind: input, shape index: {}]   ;;  %s2421_s1 = inlined_call_operand.vmem [shape: bf16[32,32], index: 1, kind: input, shape index: {}]   ;;  %s2422_s2 = inlined_call_operand.vmem [shape: f32[32,1], index: 2, kind: input, shape index: {}]   ;;  %s2423_s3 = inlined_call_operand.vmem [shape: bf16[16,32], index: 3, kind: input, shape index: {}]   ;;  %s2424_s4 = inlined_call_operand.vmem [shape: f32[16,1], index: 4, kind: input, shape index: {}]   ;;  %s2425_s5 = inlined_call_operand.vmem [shape: bf16[16,8192], index: 5, kind: output, shape index: {}]  }
   0x1   :  { %s1913_s20 = smov 0  }
   0x2 LB: > { %s1716_s21 = sadd.s32 4294967295, %s1876_s20   ;;  %s1926_s22 = sadd.s32 1, %s1876_s20   ;;  %s1876_s20 = sphi %s1913_s20, %s2429_s20   ;;  %s1872_s19 = sphi %s1911_s19, %s2428_s19   ;;  %s1868_s18 = sphi %s1909_s18, %s2427_s18  }
   0x3   : > { %s19_s23 = ssub.s32 %s1876_s20, %s1926_s22  ;;  %s22_s24 = sadd.s32 1, %s1872_s19 }
   0x4   : > { %p20_p0 = scmp.eq.s32.totalorder %s19_s23, 0  ;;  %p29_p1 = scmp.ne.s32.totalorder %s1872_s19, %s1868_s18 }
   0x5   : > { %p30_p2 = scmp.eq.s32.totalorder %s1876_s20, 0  ;;  %p143_p3 = scmp.eq.s32.totalorder %s1716_s21, 3 }
   0x6   : > { %s1937_s25 = scalar_select %p20_p0, %s1872_s19, %s22_s24  }
   0x7   : > { %p31_p4 = por %p30_p2, %p29_p1  ;;  %p1939_p5 = por %p143_p3, %p29_p1 }
   0x8   : > { %p1719_p6 = scmp.ge.s32.totalorder %s1876_s20, 4 }
   0xa   : > { %177 = sbr.rel (%p1719_p6) target bundleno = 37 (0x25), region = 32 }
  0x11   : > { %180 = sbr.rel (!%p31_p4) target bundleno = 37 (0x25), region = 36  ;;  %s182_s27 = sand.u32 (%p31_p4), 1, %s1872_s19  }
  0x12   : > { %s1806_s28 = sshll.u32 (%p31_p4), %s1876_s20, 6  ;;  %s1720_s29 = sshll.u32 (%p31_p4), %s182_s27, 8 }
  0x13   : > { %s1949_s7 = scalar_lea.vmem (%p31_p4), %s2420_s0, %s1806_s28  ;;  %s1954_s8 = scalar_lea.vmem (%p31_p4), [#allocation2], %s1720_s29 }
  0x14   : > { %v200_v0 = vld [vmem:[%s1949_s7] sm:$0xff] (%p31_p4)  ;;  %v202_v1 = vld [vmem:[%s1949_s7 + $0x8] sm:$0xff] (%p31_p4)  ;;  %v204_v2 = vld [vmem:[%s1949_s7 + $0x10] sm:$0xff] (%p31_p4) }
  0x15   : > { %201 = vst [vmem:[%s1954_s8] sm:$0xff] (%p31_p4), %v200_v0  ;;  %203 = vst [vmem:[%s1954_s8 + $0x8] sm:$0xff] (%p31_p4), %v202_v1  ;;  %v206_v3 = vld [vmem:[%s1949_s7 + $0x18] sm:$0xff] (%p31_p4)  ;;  %v208_v4 = vld [vmem:[%s1949_s7 + $0x20] sm:$0xff] (%p31_p4) }
  0x16   : > { %205 = vst [vmem:[%s1954_s8 + $0x10] sm:$0xff] (%p31_p4), %v204_v2  ;;  %v210_v5 = vld [vmem:[%s1949_s7 + $0x28] sm:$0xff] (%p31_p4)  ;;  %207 = vst [vmem:[%s1954_s8 + $0x18] sm:$0xff] (%p31_p4), %v206_v3  ;;  %v212_v6 = vld [vmem:[%s1949_s7 + $0x30] sm:$0xff] (%p31_p4) }
  0x17   : > { %209 = vst [vmem:[%s1954_s8 + $0x20] sm:$0xff] (%p31_p4), %v208_v4  ;;  %211 = vst [vmem:[%s1954_s8 + $0x28] sm:$0xff] (%p31_p4), %v210_v5  ;;  %v214_v7 = vld [vmem:[%s1949_s7 + $0x38] sm:$0xff] (%p31_p4)  ;;  %v216_v8 = vld [vmem:[%s1949_s7 + $0x100] sm:$0xff] (%p31_p4) }
  0x18   : > { %213 = vst [vmem:[%s1954_s8 + $0x30] sm:$0xff] %v212_v6  ;;  %215 = vst [vmem:[%s1954_s8 + $0x38] sm:$0xff] %v214_v7  ;;  %v218_v9 = vld [vmem:[%s1949_s7 + $0x108] sm:$0xff]  ;;  %v220_v10 = vld [vmem:[%s1949_s7 + $0x110] sm:$0xff] }
  0x19   : > { %217 = vst [vmem:[%s1954_s8 + $0x40] sm:$0xff] %v216_v8  ;;  %v222_v11 = vld [vmem:[%s1949_s7 + $0x118] sm:$0xff]  ;;  %219 = vst [vmem:[%s1954_s8 + $0x48] sm:$0xff] %v218_v9  ;;  %v224_v12 = vld [vmem:[%s1949_s7 + $0x120] sm:$0xff] }
  0x1a   : > { %221 = vst [vmem:[%s1954_s8 + $0x50] sm:$0xff] %v220_v10  ;;  %223 = vst [vmem:[%s1954_s8 + $0x58] sm:$0xff] %v222_v11  ;;  %v226_v13 = vld [vmem:[%s1949_s7 + $0x128] sm:$0xff]  ;;  %v228_v14 = vld [vmem:[%s1949_s7 + $0x130] sm:$0xff] }
  0x1b   : > { %225 = vst [vmem:[%s1954_s8 + $0x60] sm:$0xff] %v224_v12  ;;  %227 = vst [vmem:[%s1954_s8 + $0x68] sm:$0xff] %v226_v13  ;;  %v230_v15 = vld [vmem:[%s1949_s7 + $0x138] sm:$0xff]  ;;  %v232_v16 = vld [vmem:[%s1949_s7 + $0x200] sm:$0xff] }
  0x1c   : > { %229 = vst [vmem:[%s1954_s8 + $0x70] sm:$0xff] %v228_v14  ;;  %v234_v17 = vld [vmem:[%s1949_s7 + $0x208] sm:$0xff]  ;;  %231 = vst [vmem:[%s1954_s8 + $0x78] sm:$0xff] %v230_v15  ;;  %v236_v18 = vld [vmem:[%s1949_s7 + $0x210] sm:$0xff] }
  0x1d   : > { %233 = vst [vmem:[%s1954_s8 + $0x80] sm:$0xff] %v232_v16  ;;  %235 = vst [vmem:[%s1954_s8 + $0x88] sm:$0xff] %v234_v17  ;;  %v238_v19 = vld [vmem:[%s1949_s7 + $0x218] sm:$0xff]  ;;  %v240_v20 = vld [vmem:[%s1949_s7 + $0x220] sm:$0xff] }
  0x1e   : > { %237 = vst [vmem:[%s1954_s8 + $0x90] sm:$0xff] %v236_v18  ;;  %239 = vst [vmem:[%s1954_s8 + $0x98] sm:$0xff] %v238_v19  ;;  %v242_v21 = vld [vmem:[%s1949_s7 + $0x228] sm:$0xff]  ;;  %v244_v22 = vld [vmem:[%s1949_s7 + $0x230] sm:$0xff] }
  0x1f   : > { %241 = vst [vmem:[%s1954_s8 + $0xa0] sm:$0xff] %v240_v20  ;;  %v246_v23 = vld [vmem:[%s1949_s7 + $0x238] sm:$0xff]  ;;  %243 = vst [vmem:[%s1954_s8 + $0xa8] sm:$0xff] %v242_v21  ;;  %v248_v24 = vld [vmem:[%s1949_s7 + $0x300] sm:$0xff] }
  0x20   : > { %245 = vst [vmem:[%s1954_s8 + $0xb0] sm:$0xff] %v244_v22  ;;  %247 = vst [vmem:[%s1954_s8 + $0xb8] sm:$0xff] %v246_v23  ;;  %v250_v25 = vld [vmem:[%s1949_s7 + $0x308] sm:$0xff]  ;;  %v252_v26 = vld [vmem:[%s1949_s7 + $0x310] sm:$0xff] }
  0x21   : > { %249 = vst [vmem:[%s1954_s8 + $0xc0] sm:$0xff] %v248_v24  ;;  %251 = vst [vmem:[%s1954_s8 + $0xc8] sm:$0xff] %v250_v25  ;;  %v254_v27 = vld [vmem:[%s1949_s7 + $0x318] sm:$0xff]  ;;  %v256_v28 = vld [vmem:[%s1949_s7 + $0x320] sm:$0xff] }
  0x22   : > { %253 = vst [vmem:[%s1954_s8 + $0xd0] sm:$0xff] %v252_v26  ;;  %v258_v29 = vld [vmem:[%s1949_s7 + $0x328] sm:$0xff]  ;;  %255 = vst [vmem:[%s1954_s8 + $0xd8] sm:$0xff] %v254_v27  ;;  %v260_v30 = vld [vmem:[%s1949_s7 + $0x330] sm:$0xff] }
  0x23   : > { %257 = vst [vmem:[%s1954_s8 + $0xe0] sm:$0xff] %v256_v28  ;;  %259 = vst [vmem:[%s1954_s8 + $0xe8] sm:$0xff] %v258_v29  ;;  %v262_v31 = vld [vmem:[%s1949_s7 + $0x338] sm:$0xff] }
  0x24   : > { %261 = vst [vmem:[%s1954_s8 + $0xf0] sm:$0xff] %v260_v30  ;;  %263 = vst [vmem:[%s1954_s8 + $0xf8] sm:$0xff] %v262_v31 }
  0x25 PF: > { %p1723_p7 = scmp.ge.s32.totalorder %s1876_s20, 1  ;;  %p268_p8 = scmp.lt.s32.totalorder %s1876_s20, 5 }
  0x27   : > { %p269_p9 = pnand %p1723_p7, %p268_p8 }
  0x28   : > { %s275_s9 = sand.u32 (!%p269_p9), 1, %s1868_s18   ;;  %v1878_v32 = vmov (!%p269_p9), 0   ;;  %v340_v33 = vld [vmem:[%s2422_s2] sm:$0xff] (!%p269_p9)  ;;  %v341_v53 = vld [vmem:[%s2422_s2 + $0x8] sm:$0xff] (!%p269_p9)  ;;  %vm534_vm0 = vcmask (!%p269_p9), 261120   ;;  %v342_v3 = vld [vmem:[%s2422_s2 + $0x10] sm:$0xff] (!%p269_p9) }
  0x29   : > { %272 = sbr.rel (%p269_p9) target bundleno = 566 (0x236), region = 59  ;;  %s1724_s10 = sshll.u32 (!%p269_p9), %s275_s9, 8  ;;  %573 = vmatprep.mubr.bf16.mxu0 (!%p269_p9), %v1878_v32  ;;  %626 = vmatprep.mubr.bf16.mxu1 (!%p269_p9), %v1878_v32  ;;  %v2065_v57 = vld [vmem:[%s2421_s1] sm:$0xff] (!%p269_p9)   ;;  %v343_v8 = vld [vmem:[%s2422_s2 + $0x18] sm:$0xff] (!%p269_p9)  ;;  %v2109_v13 = vld [vmem:[%s2421_s1 + $0x8] sm:$0xff] (!%p269_p9)  }
  0x2a   : > { %1849 = vset.pattern.permute.xlu0 (!%p269_p9), %v1878_v32  ;;  %1850 = vset.pattern.permute.xlu1 (!%p269_p9), %v1878_v32  ;;  %s2029_s13 = scalar_lea.vmem (!%p269_p9), [#allocation2], %s1724_s10  ;;  %v1063_v11 = vld [vmem:[%s2424_s4] sm:$0xff] (!%p269_p9)  ;;  %v1064_v14 = vld [vmem:[%s2424_s4 + $0x8] sm:$0xff] (!%p269_p9) }
  0x2b   : > { %v304_v34 = vld [vmem:[%s2029_s13] sm:$0xff] (!%p269_p9)  ;;  %v305_v36 = vld [vmem:[%s2029_s13 + $0x8] sm:$0xff] (!%p269_p9)  ;;  %346 = vperm.xlu0 (!%p269_p9), %1849, %v340_v33   ;;  %v306_v47 = vld [vmem:[%s2029_s13 + $0x10] sm:$0xff] (!%p269_p9)  ;;  %356 = vperm.xlu1 (!%p269_p9), %1850, %v342_v3  }
  0x2c   : > { %v312_v35 = vld [vmem:[%s2029_s13 + $0x40] sm:$0xff] (!%p269_p9)  ;;  %v313_v38 = vld [vmem:[%s2029_s13 + $0x48] sm:$0xff] (!%p269_p9)  ;;  %v314_v49 = vld [vmem:[%s2029_s13 + $0x50] sm:$0xff] (!%p269_p9) }
  0x2d   : > { %v1729_v37 = vcombine.high (!%p269_p9), %v304_v34, %v312_v35  ;;  %v1728_v39 = vcombine.low (!%p269_p9), %v304_v34, %v312_v35  ;;  %v2036_v40 = vld [vmem:[%s2029_s13 + $0x80] sm:$0xff] (!%p269_p9)  ;;  %v1731_v42 = vcombine.high (!%p269_p9), %v305_v36, %v313_v38  ;;  %v1730_v43 = vcombine.low (!%p269_p9), %v305_v36, %v313_v38  ;;  %v2044_v45 = vld [vmem:[%s2029_s13 + $0x88] sm:$0xff] (!%p269_p9)  ;;  %v307_v50 = vld [vmem:[%s2029_s13 + $0x18] sm:$0xff] (!%p269_p9) }
  0x2e   : > { %v2039_v41 = vld [vmem:[%s2029_s13 + $0xc0] sm:$0xff] (!%p269_p9)  ;;  %v2047_v46 = vld [vmem:[%s2029_s13 + $0xc8] sm:$0xff] (!%p269_p9)  ;;  %v315_v51 = vld [vmem:[%s2029_s13 + $0x58] sm:$0xff] (!%p269_p9)  ;;  %v1733_v55 = vcombine.high (!%p269_p9), %v306_v47, %v314_v49  ;;  %v1732_v60 = vcombine.low (!%p269_p9), %v306_v47, %v314_v49 }
  0x2f   : > { %v1745_v44 = vcombine.high (!%p269_p9), %v2036_v40, %v2039_v41  ;;  %541 = vmatprep.subr.bf16.mxu0 (!%p269_p9), %v1729_v37  ;;  %v1747_v48 = vcombine.high (!%p269_p9), %v2044_v45, %v2047_v46  ;;  %594 = vmatprep.subr.bf16.mxu1 (!%p269_p9), %v1731_v42  ;;  %v1744_v52 = vcombine.low (!%p269_p9), %v2036_v40, %v2039_v41  ;;  %v2068_v58 = vld [vmem:[%s2029_s13 + $0x90] sm:$0xff] (!%p269_p9)  ;;  %v2074_v61 = vld [vmem:[%s2029_s13 + $0x98] sm:$0xff] (!%p269_p9)  ;;  %v308_v1 = vld [vmem:[%s2029_s13 + $0x20] sm:$0xff] (!%p269_p9) }
  0x30   : > { %542 = vmatpush1.bf16.msra.mxu0 %v1728_v39  ;;  %595 = vmatpush1.bf16.msra.mxu1 %v1730_v43  ;;  %v1746_v54 = vcombine.low %v2044_v45, %v2047_v46  ;;  %v1735_v56 = vcombine.high %v307_v50, %v315_v51  ;;  %v2071_v59 = vld [vmem:[%s2029_s13 + $0xd0] sm:$0xff]  ;;  %v2077_v62 = vld [vmem:[%s2029_s13 + $0xd8] sm:$0xff]  ;;  %v1734_v63 = vcombine.low %v307_v50, %v315_v51  ;;  %v316_v2 = vld [vmem:[%s2029_s13 + $0x60] sm:$0xff] }
  0x31   : > { %543 = vmatprep.subr.bf16.mxu0 %v1745_v44  ;;  %596 = vmatprep.subr.bf16.mxu1 %v1747_v48  ;;  %v1749_v0 = vcombine.high %v2068_v58, %v2071_v59  ;;  %v1751_v4 = vcombine.high %v2074_v61, %v2077_v62  ;;  %v309_v5 = vld [vmem:[%s2029_s13 + $0x28] sm:$0xff]  ;;  %v1748_v7 = vcombine.low %v2068_v58, %v2071_v59  ;;  %v2121_v15 = vld [vmem:[%s2029_s13 + $0xa0] sm:$0xff]  ;;  %v310_v22 = vld [vmem:[%s2029_s13 + $0x30] sm:$0xff] }
  0x32   : > { %351 = vperm.xlu0 %1849, %v341_v53   ;;  %v317_v6 = vld [vmem:[%s2029_s13 + $0x68] sm:$0xff]  ;;  %v1750_v9 = vcombine.low %v2074_v61, %v2077_v62  ;;  %v1737_v10 = vcombine.high %v308_v1, %v316_v2  ;;  %361 = vperm.xlu1 %1850, %v343_v8   ;;  %v2124_v16 = vld [vmem:[%s2029_s13 + $0xe0] sm:$0xff]  ;;  %v1736_v17 = vcombine.low %v308_v1, %v316_v2  ;;  %v318_v23 = vld [vmem:[%s2029_s13 + $0x70] sm:$0xff] }
  0x33   : > { %v1739_v12 = vcombine.high %v309_v5, %v317_v6  ;;  %v2127_v18 = vld [vmem:[%s2029_s13 + $0xa8] sm:$0xff]  ;;  %v1738_v20 = vcombine.low %v309_v5, %v317_v6  ;;  %v1753_v21 = vcombine.high %v2121_v15, %v2124_v16  ;;  %v311_v25 = vld [vmem:[%s2029_s13 + $0x38] sm:$0xff]  ;;  %v1752_v27 = vcombine.low %v2121_v15, %v2124_v16  ;;  %v2157_v31 = vld [vmem:[%s2029_s13 + $0xb0] sm:$0xff] }
  0x34   : > { %544 = vmatpush1.bf16.msra.mxu0 %v1744_v52  ;;  %597 = vmatpush1.bf16.msra.mxu1 %v1746_v54  ;;  %v2130_v19 = vld [vmem:[%s2029_s13 + $0xe8] sm:$0xff]  ;;  %v319_v26 = vld [vmem:[%s2029_s13 + $0x78] sm:$0xff]  ;;  %v1741_v29 = vcombine.high %v310_v22, %v318_v23  ;;  %v2160_v33 = vld [vmem:[%s2029_s13 + $0xf0] sm:$0xff]  ;;  %v1740_v34 = vcombine.low %v310_v22, %v318_v23 }
  0x35   : > { %647 = vmatprep.subr.bf16.mxu0 %v1733_v55  ;;  %700 = vmatprep.subr.bf16.mxu1 %v1735_v56  ;;  %v1755_v24 = vcombine.high %v2127_v18, %v2130_v19  ;;  %v1754_v28 = vcombine.low %v2127_v18, %v2130_v19  ;;  %v1743_v30 = vcombine.high %v311_v25, %v319_v26  ;;  %v2163_v35 = vld [vmem:[%s2029_s13 + $0xb8] sm:$0xff] }
  0x36   : > { %1067 = vperm.xlu0 %1849, %v1063_v11   ;;  %1072 = vperm.xlu1 %1850, %v1064_v14   ;;  %v2166_v36 = vld [vmem:[%s2029_s13 + $0xf8] sm:$0xff]  ;;  %v1742_v37 = vcombine.low %v311_v25, %v319_v26  ;;  %v1757_v38 = vcombine.high %v2157_v31, %v2160_v33  ;;  %v1756_v42 = vcombine.low %v2157_v31, %v2160_v33  ;;  %s1725_s13 = sshll.u32 %s275_s9, 7  ;;  %s1823_s9 = sshll.u32 (%p1939_p5), %s1716_s21, 6 }
  0x37   : > { %1760 = vmatmul.mubr.msk.bf16.vlgmr.msra.gmra.mrb[0].mxu0 %vm534_vm0, %v2065_v57  ;;  %1762 = vmatmul.mubr.msk.bf16.vlgmr.msra.gmra.mrb[0].mxu1 %vm534_vm0, %v2065_v57  ;;  %v1759_v39 = vcombine.high %v2163_v35, %v2166_v36  ;;  %v1758_v43 = vcombine.low %v2163_v35, %v2166_v36  ;;  %s2321_s18 = scalar_lea.vmem [#allocation3], %s1725_s13  ;;  %s1612_s26 = scalar_lea.vmem (%p1939_p5), %s2425_s5, %s1823_s9 }
  0x38   : > { %648 = vmatpush1.bf16.msra.mxu0 %v1732_v60  ;;  %701 = vmatpush1.bf16.msra.mxu1 %v1734_v63 }
  0x39   : > { %583 = vmatprep.mubr.bf16.mxu0 %v1878_v32  ;;  %636 = vmatprep.mubr.bf16.mxu1 %v1878_v32 }
  0x3a   : > { %649 = vmatprep.subr.bf16.mxu0 %v1749_v0  ;;  %702 = vmatprep.subr.bf16.mxu1 %v1751_v4 }
  0x3c   : > { %650 = vmatpush1.bf16.msra.mxu0 %v1748_v7  ;;  %703 = vmatpush1.bf16.msra.mxu1 %v1750_v9 }
  0x3d   : > { %753 = vmatprep.subr.bf16.mxu0 %v1737_v10  ;;  %806 = vmatprep.subr.bf16.mxu1 %v1739_v12 }
  0x3f   : > { %1761 = vmatmul.mubr.msk.bf16.gmra.mrb[4].mxu0 %vm534_vm0, %v2109_v13  ;;  %1763 = vmatmul.mubr.msk.bf16.gmra.mrb[4].mxu1 %vm534_vm0, %v2109_v13 }
  0x40   : > { %679 = vmatprep.mubr.bf16.mxu0 %v1878_v32  ;;  %732 = vmatprep.mubr.bf16.mxu1 %v1878_v32 }
  0x47   : > { %1764 = vmatmul.mubr.msk.bf16.vlgmr.msra.gmra.mrb[8].mxu0 %vm534_vm0, %v2065_v57  ;;  %1766 = vmatmul.mubr.msk.bf16.vlgmr.msra.gmra.mrb[8].mxu1 %vm534_vm0, %v2065_v57 }
  0x48   : > { %754 = vmatpush1.bf16.msra.mxu0 %v1736_v17  ;;  %807 = vmatpush1.bf16.msra.mxu1 %v1738_v20 }
  0x49   : > { %689 = vmatprep.mubr.bf16.mxu0 %v1878_v32  ;;  %742 = vmatprep.mubr.bf16.mxu1 %v1878_v32 }
  0x4a   : > { %755 = vmatprep.subr.bf16.mxu0 %v1753_v21  ;;  %808 = vmatprep.subr.bf16.mxu1 %v1755_v24 }
  0x4c   : > { %756 = vmatpush1.bf16.msra.mxu0 %v1752_v27  ;;  %809 = vmatpush1.bf16.msra.mxu1 %v1754_v28 }
  0x4d   : > { %859 = vmatprep.subr.bf16.mxu0 %v1741_v29  ;;  %912 = vmatprep.subr.bf16.mxu1 %v1743_v30 }
  0x4f   : > { %1765 = vmatmul.mubr.msk.bf16.gmra.mrb[12].mxu0 %vm534_vm0, %v2109_v13  ;;  %1767 = vmatmul.mubr.msk.bf16.gmra.mrb[12].mxu1 %vm534_vm0, %v2109_v13 }
  0x50   : > { %785 = vmatprep.mubr.bf16.mxu0 %v1878_v32  ;;  %838 = vmatprep.mubr.bf16.mxu1 %v1878_v32 }
  0x57   : > { %1768 = vmatmul.mubr.msk.bf16.vlgmr.msra.gmra.mrb[16].mxu0 %vm534_vm0, %v2065_v57  ;;  %1770 = vmatmul.mubr.msk.bf16.vlgmr.msra.gmra.mrb[16].mxu1 %vm534_vm0, %v2065_v57 }
  0x58   : > { %860 = vmatpush1.bf16.msra.mxu0 %v1740_v34  ;;  %913 = vmatpush1.bf16.msra.mxu1 %v1742_v37 }
  0x59   : > { %795 = vmatprep.mubr.bf16.mxu0 %v1878_v32  ;;  %848 = vmatprep.mubr.bf16.mxu1 %v1878_v32 }
  0x5a   : > { %861 = vmatprep.subr.bf16.mxu0 %v1757_v38  ;;  %914 = vmatprep.subr.bf16.mxu1 %v1759_v39 }
  0x5c   : > { %862 = vmatpush1.bf16.msra.mxu0 %v1756_v42  ;;  %915 = vmatpush1.bf16.msra.mxu1 %v1758_v43 }
  0x5f   : > { %1769 = vmatmul.mubr.msk.bf16.gmra.mrb[20].mxu0 %vm534_vm0, %v2109_v13  ;;  %1771 = vmatmul.mubr.msk.bf16.gmra.mrb[20].mxu1 %vm534_vm0, %v2109_v13 }
  0x60   : > { %891 = vmatprep.mubr.bf16.mxu0 %v1878_v32  ;;  %944 = vmatprep.mubr.bf16.mxu1 %v1878_v32 }
  0x67   : > { %1772 = vmatmul.mubr.msk.bf16.vlgmr.msra.gmra.mrb[24].mxu0 %vm534_vm0, %v2065_v57  ;;  %1774 = vmatmul.mubr.msk.bf16.vlgmr.msra.gmra.mrb[24].mxu1 %vm534_vm0, %v2065_v57 }
  0x68   : > { %901 = vmatprep.mubr.bf16.mxu0 %v1878_v32  ;;  %954 = vmatprep.mubr.bf16.mxu1 %v1878_v32 }
  0x6f   : > { %1773 = vmatmul.mubr.msk.bf16.gmra.mrb[28].mxu0 %vm534_vm0, %v2109_v13  ;;  %1775 = vmatmul.mubr.msk.bf16.gmra.mrb[28].mxu1 %vm534_vm0, %v2109_v13 }
  0x70   : > { %1115 = vmatprep.mubr.bf16.mxu0 %v1878_v32  ;;  %1158 = vmatprep.mubr.bf16.mxu1 %v1878_v32 }
  0xaa   : > { %v2200_v44 = vpop.permute.xlu0 %346  ;;  %v2204_v49 = vpop.permute.xlu1 %356 }
  0xb1   : > { %v2202_v47 = vpop.permute.xlu0 %351  ;;  %v2214_v21 = vpop.permute.xlu1 %361 }
 0x10a   : > { %v575_v48 = vpop.f32.mrb[0].mxu0  ;;  %v628_v51 = vpop.f32.mrb[0].mxu1 }
 0x10b   : > { %v576_v50 = vadd.f32 %v575_v48, %v2200_v44  ;;  %v577_v52 = vpop.f32.mrb[1].mxu0  ;;  %v629_v53 = vadd.f32 %v628_v51, %v2200_v44  ;;  %v630_v55 = vpop.f32.mrb[1].mxu1 }
 0x10c   : > { %v578_v54 = vadd.f32 %v577_v52, %v2200_v44  ;;  %v579_v56 = vpop.f32.mrb[2].mxu0  ;;  %v631_v57 = vadd.f32 %v630_v55, %v2200_v44  ;;  %v632_v63 = vpop.f32.mrb[2].mxu1 }
 0x10d   : > { %v580_v60 = vadd.f32 %v579_v56, %v2202_v47  ;;  %v581_v0 = vpop.f32.mrb[3].mxu0  ;;  %v633_v1 = vadd.f32 %v632_v63, %v2202_v47  ;;  %v634_v3 = vpop.f32.mrb[3].mxu1  ;;  %v965_v4 = vmax.f32 %v576_v50, 0.0  ;;  %v967_v7 = vmax.f32 %v629_v53, 0.0 }
 0x10e   : > { %v582_v2 = vadd.f32 %v581_v0, %v2202_v47  ;;  %v635_v6 = vadd.f32 %v634_v3, %v2202_v47  ;;  %v966_v8 = vmax.f32 %v578_v54, 0.0  ;;  %v968_v11 = vmax.f32 %v631_v57, 0.0 }
 0x10f   : > { %v981_v5 = vmax.f32 %v580_v60, 0.0  ;;  %v983_v9 = vmax.f32 %v633_v1, 0.0 }
 0x110   : > { %v982_v10 = vmax.f32 %v582_v2, 0.0  ;;  %v984_v13 = vmax.f32 %v635_v6, 0.0 }
 0x111   : > { %v1031_v12 = vpack.c.bf16 %v981_v5, %v965_v4  ;;  %v1033_v14 = vpack.c.bf16 %v983_v9, %v967_v7 }
 0x112   : > { %v1032_v17 = vpack.c.bf16 %v982_v10, %v966_v8  ;;  %v585_v20 = vpop.f32.mrb[4].mxu0  ;;  %v1034_v22 = vpack.c.bf16 %v984_v13, %v968_v11  ;;  %v638_v24 = vpop.f32.mrb[4].mxu1  ;;  %v2230_v10 = vld [vmem:[%s2423_s3] sm:$0xff]  }
 0x113   : > { %v586_v23 = vadd.f32 %v585_v20, %v2204_v49  ;;  %v587_v25 = vpop.f32.mrb[5].mxu0  ;;  %v639_v26 = vadd.f32 %v638_v24, %v2204_v49  ;;  %v640_v28 = vpop.f32.mrb[5].mxu1 }
 0x114   : > { %v588_v27 = vadd.f32 %v587_v25, %v2204_v49  ;;  %v589_v29 = vpop.f32.mrb[6].mxu0  ;;  %1083 = vmatprep.subr.bf16.mxu0 %v1032_v17  ;;  %v641_v30 = vadd.f32 %v640_v28, %v2204_v49  ;;  %v642_v37 = vpop.f32.mrb[6].mxu1  ;;  %1126 = vmatprep.subr.bf16.mxu1 %v1034_v22 }
 0x115   : > { %v590_v34 = vadd.f32 %v589_v29, %v2214_v21  ;;  %v591_v38 = vpop.f32.mrb[7].mxu0  ;;  %1084 = vmatpush1.bf16.msra.mxu0 %v1031_v12  ;;  %v643_v39 = vadd.f32 %v642_v37, %v2214_v21  ;;  %v644_v43 = vpop.f32.mrb[7].mxu1  ;;  %1127 = vmatpush1.bf16.msra.mxu1 %v1033_v14  ;;  %v997_v48 = vmax.f32 %v586_v23, 0.0  ;;  %v999_v52 = vmax.f32 %v639_v26, 0.0 }
 0x116   : > { %v592_v42 = vadd.f32 %v591_v38, %v2214_v21  ;;  %v645_v51 = vadd.f32 %v644_v43, %v2214_v21  ;;  %v998_v53 = vmax.f32 %v588_v27, 0.0  ;;  %v1000_v56 = vmax.f32 %v641_v30, 0.0 }
 0x117   : > { %v1013_v50 = vmax.f32 %v590_v34, 0.0  ;;  %v1015_v54 = vmax.f32 %v643_v39, 0.0 }
 0x118   : > { %v1014_v55 = vmax.f32 %v592_v42, 0.0  ;;  %v1016_v60 = vmax.f32 %v645_v51, 0.0 }
 0x119   : > { %v1047_v57 = vpack.c.bf16 %v1013_v50, %v997_v48  ;;  %v1049_v63 = vpack.c.bf16 %v1015_v54, %v999_v52 }
 0x11a   : > { %v1048_v0 = vpack.c.bf16 %v1014_v55, %v998_v53  ;;  %v681_v1 = vpop.f32.mrb[8].mxu0  ;;  %v1050_v2 = vpack.c.bf16 %v1016_v60, %v1000_v56  ;;  %v734_v4 = vpop.f32.mrb[8].mxu1 }
 0x11b   : > { %v682_v3 = vadd.f32 %v681_v1, %v2200_v44  ;;  %v683_v5 = vpop.f32.mrb[9].mxu0  ;;  %v735_v6 = vadd.f32 %v734_v4, %v2200_v44  ;;  %v736_v8 = vpop.f32.mrb[9].mxu1 }
 0x11c   : > { %v684_v7 = vadd.f32 %v683_v5, %v2200_v44  ;;  %v685_v9 = vpop.f32.mrb[10].mxu0  ;;  %1085 = vmatprep.subr.bf16.mxu0 %v1048_v0  ;;  %v737_v11 = vadd.f32 %v736_v8, %v2200_v44  ;;  %v738_v13 = vpop.f32.mrb[10].mxu1  ;;  %1128 = vmatprep.subr.bf16.mxu1 %v1050_v2 }
 0x11d   : > { %v686_v12 = vadd.f32 %v685_v9, %v2202_v47  ;;  %v687_v14 = vpop.f32.mrb[11].mxu0  ;;  %1086 = vmatpush1.bf16.msra.mxu0 %v1047_v57  ;;  %v739_v17 = vadd.f32 %v738_v13, %v2202_v47  ;;  %v740_v22 = vpop.f32.mrb[11].mxu1  ;;  %1129 = vmatpush1.bf16.msra.mxu1 %v1049_v63  ;;  %v969_v23 = vmax.f32 %v682_v3, 0.0  ;;  %v971_v26 = vmax.f32 %v735_v6, 0.0 }
 0x11e   : > { %v688_v20 = vadd.f32 %v687_v14, %v2202_v47  ;;  %v741_v25 = vadd.f32 %v740_v22, %v2202_v47  ;;  %v970_v27 = vmax.f32 %v684_v7, 0.0  ;;  %v972_v30 = vmax.f32 %v737_v11, 0.0 }
 0x11f   : > { %v985_v24 = vmax.f32 %v686_v12, 0.0  ;;  %v987_v28 = vmax.f32 %v739_v17, 0.0 }
 0x120   : > { %v986_v29 = vmax.f32 %v688_v20, 0.0  ;;  %1777 = vmatmul.mubr.msk.bf16.vlgmr.msra.gmra.mrb[32].mxu0 %vm534_vm0, %v2230_v10  ;;  %v988_v37 = vmax.f32 %v741_v25, 0.0  ;;  %1778 = vmatmul.mubr.msk.bf16.vlgmr.msra.gmra.mrb[32].mxu1 %vm534_vm0, %v2230_v10 }
 0x121   : > { %v1035_v34 = vpack.c.bf16 %v985_v24, %v969_v23  ;;  %1201 = vmatprep.mubr.bf16.mxu0 %v1878_v32  ;;  %v1037_v38 = vpack.c.bf16 %v987_v28, %v971_v26  ;;  %1244 = vmatprep.mubr.bf16.mxu1 %v1878_v32 }
 0x122   : > { %v1036_v39 = vpack.c.bf16 %v986_v29, %v970_v27  ;;  %v691_v42 = vpop.f32.mrb[12].mxu0  ;;  %v1038_v43 = vpack.c.bf16 %v988_v37, %v972_v30  ;;  %v744_v50 = vpop.f32.mrb[12].mxu1 }
 0x123   : > { %v692_v48 = vadd.f32 %v691_v42, %v2204_v49  ;;  %v693_v51 = vpop.f32.mrb[13].mxu0  ;;  %v745_v52 = vadd.f32 %v744_v50, %v2204_v49  ;;  %v746_v54 = vpop.f32.mrb[13].mxu1 }
 0x124   : > { %v694_v53 = vadd.f32 %v693_v51, %v2204_v49  ;;  %v695_v55 = vpop.f32.mrb[14].mxu0  ;;  %1169 = vmatprep.subr.bf16.mxu0 %v1036_v39  ;;  %v747_v56 = vadd.f32 %v746_v54, %v2204_v49  ;;  %v748_v60 = vpop.f32.mrb[14].mxu1  ;;  %1212 = vmatprep.subr.bf16.mxu1 %v1038_v43 }
 0x125   : > { %v696_v57 = vadd.f32 %v695_v55, %v2214_v21  ;;  %v697_v63 = vpop.f32.mrb[15].mxu0  ;;  %1170 = vmatpush1.bf16.msra.mxu0 %v1035_v34  ;;  %v749_v0 = vadd.f32 %v748_v60, %v2214_v21  ;;  %v750_v2 = vpop.f32.mrb[15].mxu1  ;;  %1213 = vmatpush1.bf16.msra.mxu1 %v1037_v38  ;;  %v1001_v3 = vmax.f32 %v692_v48, 0.0  ;;  %v1003_v6 = vmax.f32 %v745_v52, 0.0 }
 0x126   : > { %v698_v1 = vadd.f32 %v697_v63, %v2214_v21  ;;  %v751_v5 = vadd.f32 %v750_v2, %v2214_v21  ;;  %v1002_v7 = vmax.f32 %v694_v53, 0.0  ;;  %v1004_v11 = vmax.f32 %v747_v56, 0.0 }
 0x127   : > { %v1017_v4 = vmax.f32 %v696_v57, 0.0  ;;  %v1019_v8 = vmax.f32 %v749_v0, 0.0 }
 0x128   : > { %v1018_v9 = vmax.f32 %v698_v1, 0.0  ;;  %v1020_v13 = vmax.f32 %v751_v5, 0.0 }
 0x129   : > { %v1051_v12 = vpack.c.bf16 %v1017_v4, %v1001_v3  ;;  %v1053_v14 = vpack.c.bf16 %v1019_v8, %v1003_v6 }
 0x12a   : > { %v1052_v17 = vpack.c.bf16 %v1018_v9, %v1002_v7  ;;  %v787_v20 = vpop.f32.mrb[16].mxu0  ;;  %v1054_v22 = vpack.c.bf16 %v1020_v13, %v1004_v11  ;;  %v840_v24 = vpop.f32.mrb[16].mxu1 }
 0x12b   : > { %v788_v23 = vadd.f32 %v787_v20, %v2200_v44  ;;  %v789_v25 = vpop.f32.mrb[17].mxu0  ;;  %v841_v26 = vadd.f32 %v840_v24, %v2200_v44  ;;  %v842_v28 = vpop.f32.mrb[17].mxu1 }
 0x12c   : > { %v790_v27 = vadd.f32 %v789_v25, %v2200_v44  ;;  %v791_v29 = vpop.f32.mrb[18].mxu0  ;;  %1171 = vmatprep.subr.bf16.mxu0 %v1052_v17  ;;  %v843_v30 = vadd.f32 %v842_v28, %v2200_v44  ;;  %v844_v37 = vpop.f32.mrb[18].mxu1  ;;  %1214 = vmatprep.subr.bf16.mxu1 %v1054_v22 }
 0x12d   : > { %v792_v34 = vadd.f32 %v791_v29, %v2202_v47  ;;  %v793_v38 = vpop.f32.mrb[19].mxu0  ;;  %1172 = vmatpush1.bf16.msra.mxu0 %v1051_v12  ;;  %v845_v39 = vadd.f32 %v844_v37, %v2202_v47  ;;  %v846_v43 = vpop.f32.mrb[19].mxu1  ;;  %1215 = vmatpush1.bf16.msra.mxu1 %v1053_v14  ;;  %v973_v48 = vmax.f32 %v788_v23, 0.0  ;;  %v975_v52 = vmax.f32 %v841_v26, 0.0 }
 0x12e   : > { %v794_v42 = vadd.f32 %v793_v38, %v2202_v47  ;;  %v847_v51 = vadd.f32 %v846_v43, %v2202_v47  ;;  %v974_v53 = vmax.f32 %v790_v27, 0.0  ;;  %v976_v56 = vmax.f32 %v843_v30, 0.0 }
 0x12f   : > { %v989_v50 = vmax.f32 %v792_v34, 0.0  ;;  %v991_v54 = vmax.f32 %v845_v39, 0.0 }
 0x130   : > { %v990_v55 = vmax.f32 %v794_v42, 0.0  ;;  %1779 = vmatmul.mubr.msk.bf16.vlgmr.msra.gmra.mrb[36].mxu0 %vm534_vm0, %v2230_v10  ;;  %v992_v60 = vmax.f32 %v847_v51, 0.0  ;;  %1780 = vmatmul.mubr.msk.bf16.vlgmr.msra.gmra.mrb[36].mxu1 %vm534_vm0, %v2230_v10 }
 0x131   : > { %v1039_v57 = vpack.c.bf16 %v989_v50, %v973_v48  ;;  %1287 = vmatprep.mubr.bf16.mxu0 %v1878_v32  ;;  %v1041_v63 = vpack.c.bf16 %v991_v54, %v975_v52  ;;  %1330 = vmatprep.mubr.bf16.mxu1 %v1878_v32 }
 0x132   : > { %v1040_v0 = vpack.c.bf16 %v990_v55, %v974_v53  ;;  %v797_v1 = vpop.f32.mrb[20].mxu0  ;;  %v1042_v2 = vpack.c.bf16 %v992_v60, %v976_v56  ;;  %v850_v4 = vpop.f32.mrb[20].mxu1 }
 0x133   : > { %v798_v3 = vadd.f32 %v797_v1, %v2204_v49  ;;  %v799_v5 = vpop.f32.mrb[21].mxu0  ;;  %v851_v6 = vadd.f32 %v850_v4, %v2204_v49  ;;  %v852_v8 = vpop.f32.mrb[21].mxu1 }
 0x134   : > { %v800_v7 = vadd.f32 %v799_v5, %v2204_v49  ;;  %v801_v9 = vpop.f32.mrb[22].mxu0  ;;  %1255 = vmatprep.subr.bf16.mxu0 %v1040_v0  ;;  %v853_v11 = vadd.f32 %v852_v8, %v2204_v49  ;;  %v854_v13 = vpop.f32.mrb[22].mxu1  ;;  %1298 = vmatprep.subr.bf16.mxu1 %v1042_v2 }
 0x135   : > { %v802_v12 = vadd.f32 %v801_v9, %v2214_v21  ;;  %v803_v14 = vpop.f32.mrb[23].mxu0  ;;  %1256 = vmatpush1.bf16.msra.mxu0 %v1039_v57  ;;  %v855_v17 = vadd.f32 %v854_v13, %v2214_v21  ;;  %v856_v22 = vpop.f32.mrb[23].mxu1  ;;  %1299 = vmatpush1.bf16.msra.mxu1 %v1041_v63  ;;  %v1005_v23 = vmax.f32 %v798_v3, 0.0  ;;  %v1007_v26 = vmax.f32 %v851_v6, 0.0 }
 0x136   : > { %v804_v20 = vadd.f32 %v803_v14, %v2214_v21  ;;  %v857_v25 = vadd.f32 %v856_v22, %v2214_v21  ;;  %v1006_v27 = vmax.f32 %v800_v7, 0.0  ;;  %v1008_v30 = vmax.f32 %v853_v11, 0.0 }
 0x137   : > { %v1021_v24 = vmax.f32 %v802_v12, 0.0  ;;  %v1023_v28 = vmax.f32 %v855_v17, 0.0 }
 0x138   : > { %v1022_v29 = vmax.f32 %v804_v20, 0.0  ;;  %v1024_v37 = vmax.f32 %v857_v25, 0.0 }
 0x139   : > { %v1055_v34 = vpack.c.bf16 %v1021_v24, %v1005_v23  ;;  %v1057_v38 = vpack.c.bf16 %v1023_v28, %v1007_v26 }
 0x13a   : > { %v1056_v39 = vpack.c.bf16 %v1022_v29, %v1006_v27  ;;  %v893_v42 = vpop.f32.mrb[24].mxu0  ;;  %v1058_v43 = vpack.c.bf16 %v1024_v37, %v1008_v30  ;;  %v946_v50 = vpop.f32.mrb[24].mxu1 }
 0x13b   : > { %v894_v48 = vadd.f32 %v893_v42, %v2200_v44  ;;  %v895_v51 = vpop.f32.mrb[25].mxu0  ;;  %v947_v52 = vadd.f32 %v946_v50, %v2200_v44  ;;  %v948_v54 = vpop.f32.mrb[25].mxu1 }
 0x13c   : > { %v896_v53 = vadd.f32 %v895_v51, %v2200_v44  ;;  %v897_v55 = vpop.f32.mrb[26].mxu0  ;;  %1257 = vmatprep.subr.bf16.mxu0 %v1056_v39  ;;  %v949_v56 = vadd.f32 %v948_v54, %v2200_v44  ;;  %v950_v60 = vpop.f32.mrb[26].mxu1  ;;  %1300 = vmatprep.subr.bf16.mxu1 %v1058_v43 }
 0x13d   : > { %v898_v57 = vadd.f32 %v897_v55, %v2202_v47  ;;  %v899_v63 = vpop.f32.mrb[27].mxu0  ;;  %1258 = vmatpush1.bf16.msra.mxu0 %v1055_v34  ;;  %v951_v0 = vadd.f32 %v950_v60, %v2202_v47  ;;  %v952_v2 = vpop.f32.mrb[27].mxu1  ;;  %1301 = vmatpush1.bf16.msra.mxu1 %v1057_v38  ;;  %v977_v3 = vmax.f32 %v894_v48, 0.0  ;;  %v979_v6 = vmax.f32 %v947_v52, 0.0 }
 0x13e   : > { %v900_v1 = vadd.f32 %v899_v63, %v2202_v47  ;;  %v953_v5 = vadd.f32 %v952_v2, %v2202_v47  ;;  %v978_v7 = vmax.f32 %v896_v53, 0.0  ;;  %v980_v9 = vmax.f32 %v949_v56, 0.0  ;;  %v2302_v63 = vpop.permute.xlu1 %1072 }
 0x13f   : > { %v993_v4 = vmax.f32 %v898_v57, 0.0  ;;  %v995_v8 = vmax.f32 %v951_v0, 0.0  ;;  %v1427_v60 = vunpack.c.l.bf16 %v2036_v40  ;;  %v1428_v2 = vunpack.c.h.bf16 %v2036_v40 }
 0x140   : > { %v994_v44 = vmax.f32 %v900_v1, 0.0  ;;  %1781 = vmatmul.mubr.msk.bf16.vlgmr.msra.gmra.mrb[40].mxu0 %vm534_vm0, %v2230_v10  ;;  %v996_v12 = vmax.f32 %v953_v5, 0.0  ;;  %1782 = vmatmul.mubr.msk.bf16.vlgmr.msra.gmra.mrb[40].mxu1 %vm534_vm0, %v2230_v10  ;;  %v1429_v1 = vunpack.c.l.bf16 %v2044_v45  ;;  %v1444_v40 = vunpack.c.h.bf16 %v2039_v41 }
 0x141   : > { %v1043_v11 = vpack.c.bf16 %v993_v4, %v977_v3  ;;  %1373 = vmatprep.mubr.bf16.mxu0 %v1878_v32  ;;  %v1045_v13 = vpack.c.bf16 %v995_v8, %v979_v6  ;;  %1416 = vmatprep.mubr.bf16.mxu1 %v1878_v32  ;;  %v1430_v6 = vunpack.c.h.bf16 %v2044_v45 }
 0x142   : > { %v1044_v14 = vpack.c.bf16 %v994_v44, %v978_v7  ;;  %v903_v17 = vpop.f32.mrb[28].mxu0  ;;  %v1046_v47 = vpack.c.bf16 %v996_v12, %v980_v9  ;;  %v956_v22 = vpop.f32.mrb[28].mxu1  ;;  %v1443_v7 = vunpack.c.l.bf16 %v2039_v41 }
 0x143   : > { %v904_v20 = vadd.f32 %v903_v17, %v2204_v49  ;;  %v905_v23 = vpop.f32.mrb[29].mxu0  ;;  %v957_v24 = vadd.f32 %v956_v22, %v2204_v49  ;;  %v958_v26 = vpop.f32.mrb[29].mxu1 }
 0x144   : > { %v906_v25 = vadd.f32 %v905_v23, %v2204_v49  ;;  %v907_v27 = vpop.f32.mrb[30].mxu0  ;;  %1341 = vmatprep.subr.bf16.mxu0 %v1044_v14  ;;  %v959_v28 = vadd.f32 %v958_v26, %v2204_v49  ;;  %v960_v30 = vpop.f32.mrb[30].mxu1  ;;  %1384 = vmatprep.subr.bf16.mxu1 %v1046_v47  ;;  %v1446_v47 = vunpack.c.h.bf16 %v2047_v46 }
 0x145   : > { %v908_v29 = vadd.f32 %v907_v27, %v2214_v21  ;;  %v909_v34 = vpop.f32.mrb[31].mxu0  ;;  %1342 = vmatpush1.bf16.msra.mxu0 %v1043_v11  ;;  %v961_v32 = vadd.f32 %v960_v30, %v2214_v21  ;;  %v962_v38 = vpop.f32.mrb[31].mxu1  ;;  %1385 = vmatpush1.bf16.msra.mxu1 %v1045_v13  ;;  %v1009_v39 = vmax.f32 %v904_v20, 0.0  ;;  %v1011_v48 = vmax.f32 %v957_v24, 0.0 }
 0x146   : > { %v910_v37 = vadd.f32 %v909_v34, %v2214_v21  ;;  %v963_v43 = vadd.f32 %v962_v38, %v2214_v21  ;;  %v1010_v50 = vmax.f32 %v906_v25, 0.0  ;;  %v1012_v52 = vmax.f32 %v959_v28, 0.0  ;;  %v2299_v21 = vpop.permute.xlu0 %1067 }
 0x147   : > { %v1025_v42 = vmax.f32 %v908_v29, 0.0  ;;  %v1027_v51 = vmax.f32 %v961_v32, 0.0  ;;  %v1445_v11 = vunpack.c.l.bf16 %v2047_v46  ;;  %v1431_v38 = vunpack.c.l.bf16 %v2068_v58 }
 0x148   : > { %v1026_v49 = vmax.f32 %v910_v37, 0.0  ;;  %v1028_v54 = vmax.f32 %v963_v43, 0.0  ;;  %v1432_v43 = vunpack.c.h.bf16 %v2068_v58 }
 0x149   : > { %v1059_v53 = vpack.c.bf16 %v1025_v42, %v1009_v39  ;;  %v1061_v55 = vpack.c.bf16 %v1027_v51, %v1011_v48  ;;  %v1433_v42 = vunpack.c.l.bf16 %v2074_v61 }
 0x14a   : > { %v1060_v56 = vpack.c.bf16 %v1026_v49, %v1010_v50  ;;  %v1062_v57 = vpack.c.bf16 %v1028_v54, %v1012_v52  ;;  %v1434_v49 = vunpack.c.h.bf16 %v2074_v61  ;;  %v1447_v52 = vunpack.c.l.bf16 %v2071_v59 }
 0x14c   : > { %1343 = vmatprep.subr.bf16.mxu0 %v1060_v56  ;;  %1386 = vmatprep.subr.bf16.mxu1 %v1062_v57  ;;  %v1449_v57 = vunpack.c.l.bf16 %v2077_v62 }
 0x14d   : > { %1344 = vmatpush1.bf16.msra.mxu0 %v1059_v53  ;;  %1387 = vmatpush1.bf16.msra.mxu1 %v1061_v55 }
 0x150   : > { %1783 = vmatmul.mubr.msk.bf16.vlgmr.msra.gmra.mrb[44].mxu0 %vm534_vm0, %v2230_v10  ;;  %1784 = vmatmul.mubr.msk.bf16.vlgmr.msra.gmra.mrb[44].mxu1 %vm534_vm0, %v2230_v10 }
 0x1f3   : > { %v1117_v0 = vpop.f32.mrb[32].mxu0  ;;  %v1160_v4 = vpop.f32.mrb[32].mxu1 }
 0x1f4   : > { %v1118_v3 = vadd.f32 %v1117_v0, %v2299_v21  ;;  %v1119_v5 = vpop.f32.mrb[33].mxu0  ;;  %v1161_v10 = vadd.f32 %v1160_v4, %v2299_v21  ;;  %v1162_v44 = vpop.f32.mrb[33].mxu1 }
 0x1f5   : > { %v1120_v8 = vadd.f32 %v1119_v5, %v2299_v21  ;;  %v1121_v9 = vpop.f32.mrb[34].mxu0  ;;  %v1163_v13 = vadd.f32 %v1162_v44, %v2299_v21  ;;  %v1164_v45 = vpop.f32.mrb[34].mxu1 }
 0x1f6   : > { %v1459_v12 = vadd.f32 %v1427_v60, %v1118_v3  ;;  %v1122_v14 = vadd.f32 %v1121_v9, %v2302_v63  ;;  %v1123_v17 = vpop.f32.mrb[35].mxu0  ;;  %v1461_v20 = vadd.f32 %v1429_v1, %v1161_v10  ;;  %v1165_v23 = vadd.f32 %v1164_v45, %v2302_v63  ;;  %v1166_v25 = vpop.f32.mrb[35].mxu1 }
 0x1f7   : > { %v1460_v22 = vadd.f32 %v1428_v2, %v1120_v8  ;;  %v1124_v24 = vadd.f32 %v1123_v17, %v2302_v63  ;;  %v1462_v26 = vadd.f32 %v1430_v6, %v1163_v13  ;;  %v1167_v41 = vadd.f32 %v1166_v25, %v2302_v63 }
 0x1f8   : > { %v1475_v27 = vadd.f32 %v1443_v7, %v1122_v14  ;;  %v1477_v29 = vadd.f32 %v1445_v11, %v1165_v23  ;;  %v1448_v60 = vunpack.c.h.bf16 %v2071_v59  ;;  %v1450_v3 = vunpack.c.h.bf16 %v2077_v62 }
 0x1f9   : > { %v1807_v28 = vpack.c.bf16 %v1460_v22, %v1459_v12  ;;  %v1476_v30 = vadd.f32 %v1444_v40, %v1124_v24  ;;  %v1808_v34 = vpack.c.bf16 %v1462_v26, %v1461_v20  ;;  %v1478_v32 = vadd.f32 %v1446_v47, %v1167_v41 }
 0x1fa   : > { %v1435_v45 = vunpack.c.l.bf16 %v2121_v15  ;;  %v1437_v47 = vunpack.c.l.bf16 %v2127_v18  ;;  %v1436_v20 = vunpack.c.h.bf16 %v2121_v15  ;;  %v1438_v25 = vunpack.c.h.bf16 %v2127_v18 }
 0x1fb   : > { %1587 = vst [vmem:[%s2321_s18] sm:$0xff] %v1807_v28  ;;  %v1815_v46 = vpack.c.bf16 %v1476_v30, %v1475_v27  ;;  %1588 = vst [vmem:[%s2321_s18 + $0x8] sm:$0xff] %v1808_v34  ;;  %v1816_v37 = vpack.c.bf16 %v1478_v32, %v1477_v29  ;;  %v1451_v26 = vunpack.c.l.bf16 %v2124_v16  ;;  %v1453_v30 = vunpack.c.l.bf16 %v2130_v19 }
 0x1fc   : > { %v1452_v34 = vunpack.c.h.bf16 %v2124_v16 }
 0x1fd   : > { %1595 = vst [vmem:[%s2321_s18 + $0x40] sm:$0xff] %v1815_v46  ;;  %1596 = vst [vmem:[%s2321_s18 + $0x48] sm:$0xff] %v1816_v37 }
 0x203   : > { %v1203_v39 = vpop.f32.mrb[36].mxu0  ;;  %v1246_v50 = vpop.f32.mrb[36].mxu1 }
 0x204   : > { %v1204_v48 = vadd.f32 %v1203_v39, %v2299_v21  ;;  %v1205_v51 = vpop.f32.mrb[37].mxu0  ;;  %v1247_v53 = vadd.f32 %v1246_v50, %v2299_v21  ;;  %v1248_v55 = vpop.f32.mrb[37].mxu1 }
 0x205   : > { %v1206_v54 = vadd.f32 %v1205_v51, %v2299_v21  ;;  %v1207_v56 = vpop.f32.mrb[38].mxu0  ;;  %v1249_v58 = vadd.f32 %v1248_v55, %v2299_v21  ;;  %v1250_v2 = vpop.f32.mrb[38].mxu1 }
 0x206   : > { %v1463_v0 = vadd.f32 %v1431_v38, %v1204_v48  ;;  %v1208_v1 = vadd.f32 %v1207_v56, %v2302_v63  ;;  %v1209_v61 = vpop.f32.mrb[39].mxu0  ;;  %v1465_v4 = vadd.f32 %v1433_v42, %v1247_v53  ;;  %v1251_v6 = vadd.f32 %v1250_v2, %v2302_v63  ;;  %v1252_v59 = vpop.f32.mrb[39].mxu1 }
 0x207   : > { %v1464_v5 = vadd.f32 %v1432_v43, %v1206_v54  ;;  %v1210_v7 = vadd.f32 %v1209_v61, %v2302_v63  ;;  %v1466_v10 = vadd.f32 %v1434_v49, %v1249_v58  ;;  %v1253_v44 = vadd.f32 %v1252_v59, %v2302_v63 }
 0x208   : > { %v1479_v8 = vadd.f32 %v1447_v52, %v1208_v1  ;;  %v1481_v11 = vadd.f32 %v1449_v57, %v1251_v6  ;;  %v1454_v38 = vunpack.c.h.bf16 %v2130_v19  ;;  %v1441_v58 = vunpack.c.l.bf16 %v2163_v35 }
 0x209   : > { %v1809_v9 = vpack.c.bf16 %v1464_v5, %v1463_v0  ;;  %v1480_v40 = vadd.f32 %v1448_v60, %v1210_v7  ;;  %v1810_v12 = vpack.c.bf16 %v1466_v10, %v1465_v4  ;;  %v1482_v13 = vadd.f32 %v1450_v3, %v1253_v44 }
 0x20a   : > { %v1439_v60 = vunpack.c.l.bf16 %v2157_v31  ;;  %v1440_v1 = vunpack.c.h.bf16 %v2157_v31  ;;  %v1442_v4 = vunpack.c.h.bf16 %v2163_v35  ;;  %v1455_v5 = vunpack.c.l.bf16 %v2160_v33 }
 0x20b   : > { %1589 = vst [vmem:[%s2321_s18 + $0x10] sm:$0xff] %v1809_v9  ;;  %v1817_v62 = vpack.c.bf16 %v1480_v40, %v1479_v8  ;;  %1590 = vst [vmem:[%s2321_s18 + $0x18] sm:$0xff] %v1810_v12  ;;  %v1818_v14 = vpack.c.bf16 %v1482_v13, %v1481_v11  ;;  %v1457_v8 = vunpack.c.l.bf16 %v2166_v36  ;;  %v1456_v44 = vunpack.c.h.bf16 %v2160_v33 }
 0x20c   : > { %v1458_v12 = vunpack.c.h.bf16 %v2166_v36 }
 0x20d   : > { %1597 = vst [vmem:[%s2321_s18 + $0x50] sm:$0xff] %v1817_v62  ;;  %1598 = vst [vmem:[%s2321_s18 + $0x58] sm:$0xff] %v1818_v14 }
 0x213   : > { %v1289_v17 = vpop.f32.mrb[40].mxu0  ;;  %v1332_v23 = vpop.f32.mrb[40].mxu1 }
 0x214   : > { %v1290_v22 = vadd.f32 %v1289_v17, %v2299_v21  ;;  %v1291_v24 = vpop.f32.mrb[41].mxu0  ;;  %v1333_v27 = vadd.f32 %v1332_v23, %v2299_v21  ;;  %v1334_v28 = vpop.f32.mrb[41].mxu1 }
 0x215   : > { %v1292_v41 = vadd.f32 %v1291_v24, %v2299_v21  ;;  %v1293_v29 = vpop.f32.mrb[42].mxu0  ;;  %v1335_v15 = vadd.f32 %v1334_v28, %v2299_v21  ;;  %v1336_v37 = vpop.f32.mrb[42].mxu1  ;;  %v1631_v28 = vld [vmem:[%s2321_s18 + $0x18] sm:$0xff] (%p1939_p5) }
 0x216   : > { %v1467_v32 = vadd.f32 %v1435_v45, %v1290_v22  ;;  %v1294_v46 = vadd.f32 %v1293_v29, %v2302_v63  ;;  %v1295_v18 = vpop.f32.mrb[43].mxu0  ;;  %v1469_v39 = vadd.f32 %v1437_v47, %v1333_v27  ;;  %v1337_v43 = vadd.f32 %v1336_v37, %v2302_v63  ;;  %v1338_v16 = vpop.f32.mrb[43].mxu1  ;;  %v1627_v27 = vld [vmem:[%s2321_s18 + $0x8] sm:$0xff] (%p1939_p5)  ;;  %1632 = vst [vmem:[%s1612_s26 + $0x18] sm:$0xff] (%p1939_p5), %v1631_v28  ;;  %v1645_v37 = vld [vmem:[%s2321_s18 + $0x50] sm:$0xff] (%p1939_p5) }
 0x217   : > { %v1468_v42 = vadd.f32 %v1436_v20, %v1292_v41  ;;  %v1296_v48 = vadd.f32 %v1295_v18, %v2302_v63  ;;  %v1470_v50 = vadd.f32 %v1438_v25, %v1335_v15  ;;  %v1339_v49 = vadd.f32 %v1338_v16, %v2302_v63  ;;  %v1629_v41 = vld [vmem:[%s2321_s18 + $0x10] sm:$0xff] (%p1939_p5)  ;;  %1628 = vst [vmem:[%s1612_s26 + $0x8] sm:$0xff] (%p1939_p5), %v1627_v27  ;;  %v1641_v15 = vld [vmem:[%s2321_s18 + $0x40] sm:$0xff] (%p1939_p5)  ;;  %v1647_v18 = vld [vmem:[%s2321_s18 + $0x58] sm:$0xff] (%p1939_p5) }
 0x218   : > { %v1483_v51 = vadd.f32 %v1451_v26, %v1294_v46  ;;  %v1485_v53 = vadd.f32 %v1453_v30, %v1337_v43  ;;  %1630 = vst [vmem:[%s1612_s26 + $0x10] sm:$0xff] (%p1939_p5), %v1629_v41  ;;  %1642 = vst [vmem:[%s1612_s26 + $0x100] sm:$0xff] (%p1939_p5), %v1641_v15  ;;  %v1643_v46 = vld [vmem:[%s2321_s18 + $0x48] sm:$0xff] (%p1939_p5) }
 0x219   : > { %v1811_v52 = vpack.c.bf16 %v1468_v42, %v1467_v32  ;;  %v1484_v54 = vadd.f32 %v1452_v34, %v1296_v48  ;;  %v1812_v55 = vpack.c.bf16 %v1470_v50, %v1469_v39  ;;  %v1486_v56 = vadd.f32 %v1454_v38, %v1339_v49  ;;  %1644 = vst [vmem:[%s1612_s26 + $0x108] sm:$0xff] (%p1939_p5), %v1643_v46 }
 0x21a   : > { %1646 = vst [vmem:[%s1612_s26 + $0x110] sm:$0xff] (%p1939_p5), %v1645_v37  ;;  %1648 = vst [vmem:[%s1612_s26 + $0x118] sm:$0xff] (%p1939_p5), %v1647_v18 }
 0x21b   : > { %1591 = vst [vmem:[%s2321_s18 + $0x20] sm:$0xff] %v1811_v52  ;;  %v1819_v19 = vpack.c.bf16 %v1484_v54, %v1483_v51  ;;  %1592 = vst [vmem:[%s2321_s18 + $0x28] sm:$0xff] %v1812_v55  ;;  %v1820_v57 = vpack.c.bf16 %v1486_v56, %v1485_v53 }
 0x21d   : > { %1599 = vst [vmem:[%s2321_s18 + $0x60] sm:$0xff] %v1819_v19  ;;  %1600 = vst [vmem:[%s2321_s18 + $0x68] sm:$0xff] %v1820_v57 }
 0x222   : > { %v1633_v29 = vld [vmem:[%s2321_s18 + $0x20] sm:$0xff] (%p1939_p5)  ;;  %v1635_v30 = vld [vmem:[%s2321_s18 + $0x28] sm:$0xff] (%p1939_p5) }
 0x223   : > { %v1375_v0 = vpop.f32.mrb[44].mxu0  ;;  %v1418_v61 = vpop.f32.mrb[44].mxu1  ;;  %1634 = vst [vmem:[%s1612_s26 + $0x20] sm:$0xff] (%p1939_p5), %v1633_v29  ;;  %1636 = vst [vmem:[%s1612_s26 + $0x28] sm:$0xff] (%p1939_p5), %v1635_v30 }
 0x224   : > { %v1376_v2 = vadd.f32 %v1375_v0, %v2299_v21  ;;  %v1377_v3 = vpop.f32.mrb[45].mxu0  ;;  %v1419_v6 = vadd.f32 %v1418_v61, %v2299_v21  ;;  %v1420_v59 = vpop.f32.mrb[45].mxu1  ;;  %v1649_v38 = vld [vmem:[%s2321_s18 + $0x60] sm:$0xff] (%p1939_p5)  ;;  %v1651_v39 = vld [vmem:[%s2321_s18 + $0x68] sm:$0xff] (%p1939_p5) }
 0x225   : > { %v1378_v7 = vadd.f32 %v1377_v3, %v2299_v21  ;;  %v1379_v10 = vpop.f32.mrb[46].mxu0  ;;  %v1421_v31 = vadd.f32 %v1420_v59, %v2299_v21  ;;  %v1422_v40 = vpop.f32.mrb[46].mxu1  ;;  %1650 = vst [vmem:[%s1612_s26 + $0x120] sm:$0xff] (%p1939_p5), %v1649_v38  ;;  %1652 = vst [vmem:[%s1612_s26 + $0x128] sm:$0xff] (%p1939_p5), %v1651_v39 }
 0x226   : > { %v1471_v9 = vadd.f32 %v1439_v60, %v1376_v2  ;;  %v1380_v11 = vadd.f32 %v1379_v10, %v2302_v63  ;;  %v1381_v35 = vpop.f32.mrb[47].mxu0  ;;  %v1473_v13 = vadd.f32 %v1441_v58, %v1419_v6  ;;  %v1423_v14 = vadd.f32 %v1422_v40, %v2302_v63  ;;  %v1424_v33 = vpop.f32.mrb[47].mxu1 }
 0x227   : > { %v1472_v62 = vadd.f32 %v1440_v1, %v1378_v7  ;;  %v1382_v45 = vadd.f32 %v1381_v35, %v2302_v63  ;;  %v1474_v17 = vadd.f32 %v1442_v4, %v1421_v31  ;;  %v1425_v21 = vadd.f32 %v1424_v33, %v2302_v63  ;;  %1609 = sbr.rel (!%p1939_p5) target bundleno = 566 (0x236), region = 67  ;;  %v1625_v63 = vld [vmem:[%s2321_s18] sm:$0xff] (%p1939_p5) }
 0x228   : > { %v1487_v47 = vadd.f32 %v1455_v5, %v1380_v11  ;;  %v1489_v22 = vadd.f32 %v1457_v8, %v1423_v14  ;;  %1626 = vst [vmem:[%s1612_s26] sm:$0xff] (%p1939_p5), %v1625_v63 }
 0x229   : > { %v1813_v20 = vpack.c.bf16 %v1472_v62, %v1471_v9  ;;  %v1488_v23 = vadd.f32 %v1456_v44, %v1382_v45  ;;  %v1814_v24 = vpack.c.bf16 %v1474_v17, %v1473_v13  ;;  %v1490_v25 = vadd.f32 %v1458_v12, %v1425_v21 }
 0x22b   : > { %1593 = vst [vmem:[%s2321_s18 + $0x30] sm:$0xff] %v1813_v20  ;;  %v1821_v36 = vpack.c.bf16 %v1488_v23, %v1487_v47  ;;  %1594 = vst [vmem:[%s2321_s18 + $0x38] sm:$0xff] %v1814_v24  ;;  %v1822_v26 = vpack.c.bf16 %v1490_v25, %v1489_v22 }
 0x22d   : > { %1601 = vst [vmem:[%s2321_s18 + $0x70] sm:$0xff] %v1821_v36  ;;  %1602 = vst [vmem:[%s2321_s18 + $0x78] sm:$0xff] %v1822_v26 }
 0x232   : > { %v1637_v34 = vld [vmem:[%s2321_s18 + $0x30] sm:$0xff]  ;;  %v1639_v32 = vld [vmem:[%s2321_s18 + $0x38] sm:$0xff] }
 0x233   : > { %1638 = vst [vmem:[%s1612_s26 + $0x30] sm:$0xff] %v1637_v34  ;;  %1640 = vst [vmem:[%s1612_s26 + $0x38] sm:$0xff] %v1639_v32 }
 0x234   : > { %v1653_v42 = vld [vmem:[%s2321_s18 + $0x70] sm:$0xff]  ;;  %v1655_v43 = vld [vmem:[%s2321_s18 + $0x78] sm:$0xff] }
 0x235   : > { %1654 = vst [vmem:[%s1612_s26 + $0x130] sm:$0xff] %v1653_v42  ;;  %1656 = vst [vmem:[%s1612_s26 + $0x138] sm:$0xff] %v1655_v43 }
 0x236 PF: > { %p12_p10 = scmp.ge.s32.totalorder %s1926_s22, 6   ;;  %s2427_s18 = smov %s1872_s19 }
 0x237   : > { %s2428_s19 = smov %s1937_s25  ;;  %s2429_s20 = smov %s1926_s22 }
 0x238   :  { %14 = sbr.rel (!%p12_p10) target bundleno = 2 (0x2), region = 121 }

</bundles_post_ra>
